<compile_context>
chip_gen: v7x
topology: tpu7x:2x2x1
jax: 0.10.0
libtpu: 0.0.40
codegen_flags: <defaults>
</compile_context>

<pallas_src>
import jax
import jax.numpy as jnp
from jax import lax
from jax.experimental import pallas as pl
from jax.experimental.pallas import tpu as pltpu

IN_FEATURES = 60
HIDDEN = 30


def _round_up(v, m):
    return ((v + m - 1) // m) * m


def _mlp_kernel(x_ref, w1t_ref, b1_ref, w2_ref, b2_ref, o_ref):
    # Layer 1, weights-stationary with batch streaming on the MXU N dimension:
    #   (30, 60) @ (TB, 60)^T -> (30, TB)   (batch on lanes from here on).
    h = lax.dot_general(
        w1t_ref[...], x_ref[...],
        dimension_numbers=(((1,), (1,)), ((), ())),
        preferred_element_type=jnp.float32,
    )
    # Bias (lane-broadcast of a (30,1) column) + ReLU on the lane-dense (30, TB) tile.
    h = jnp.maximum(h + b1_ref[...], 0.0)

    # Layer 2: per-row dot against the (30,) weight column = VPU multiply + sublane (XLU)
    # reduce -> (1, TB).  No MXU weight push needed for an N=1 output.
    y = jnp.sum(h * w2_ref[...], axis=0, keepdims=True)          # (1, TB)
    y = y + b2_ref[0]                                            # scalar bias from SMEM

    # Sigmoid on the lane-dense slab: exp and approximate reciprocal both use the EUP slot.
    o_ref[...] = pl.reciprocal(1.0 + jnp.exp(-y), approx=True).astype(o_ref.dtype)


def housing_model_forward(x, w1, b1, w2, b2, *, block_rows=8192):
    """x: (B, 60) f32 -> (B, 1) f32, matching HousingModel.forward."""
    B, F = x.shape
    assert F == IN_FEATURES

    if B <= 128:
        # Single tile covering the whole (possibly ragged) batch: full-array block shapes are
        # always legal, so no rounding / padding needed.
        tb = B
    else:
        # Multiple-of-128 tile (lane-dense output block requirement, and a fortiori the
        # sublane multiple-of-8 requirement on the x block).  Cap at ~cdiv(B,2) so the grid has
        # at least 2 blocks and both v7x TensorCores get work; Pallas masks the ragged tail.
        tb = min(_round_up(block_rows, 128), _round_up(pl.cdiv(B, 2), 128))
    n_tiles = pl.cdiv(B, tb)

    w1_t = w1.T                        # (30, 60) pre-transposed once in the wrapper
    b1_col = b1.reshape(HIDDEN, 1)     # (30, 1) column, broadcast over lanes in-kernel
    w2_col = w2.reshape(HIDDEN, 1)     # (30, 1) column for the VPU/XLU layer-2 reduce
    b2_s = b2.reshape(1)               # (1,) scalar, placed in SMEM

    out = pl.pallas_call(
        _mlp_kernel,
        out_shape=jax.ShapeDtypeStruct((1, B), jnp.float32),       # lane-dense output slab
        grid=(n_tiles,),
        in_specs=[
            pl.BlockSpec((tb, IN_FEATURES), lambda i: (i, 0)),      # x: tiled over batch
            pl.BlockSpec((HIDDEN, IN_FEATURES), lambda i: (0, 0)),  # W1^T: resident in VMEM
            pl.BlockSpec((HIDDEN, 1), lambda i: (0, 0)),            # b1 column: resident
            pl.BlockSpec((HIDDEN, 1), lambda i: (0, 0)),            # w2 column: resident
            pl.BlockSpec(memory_space=pltpu.MemorySpace.SMEM),      # b2 scalar in SMEM
        ],
        out_specs=pl.BlockSpec((1, tb), lambda i: (0, i)),
        compiler_params=pltpu.CompilerParams(
            dimension_semantics=("parallel",),    # shard batch blocks across v7x's 2 TCs
            vmem_limit_bytes=32 * 1024 * 1024,
        ),
    )(x, w1_t, b1_col, w2_col, b2_s)
    return out.reshape(B, 1)


def init_params(key):
    """Deterministic init mimicking nn.Linear's uniform(-1/sqrt(fan_in), 1/sqrt(fan_in))."""
    k1, k2, k3, k4 = jax.random.split(key, 4)
    bound1 = 1.0 / jnp.sqrt(60.0)
    bound2 = 1.0 / jnp.sqrt(30.0)
    w1 = jax.random.uniform(k1, (60, 30), jnp.float32, -bound1, bound1)
    b1 = jax.random.uniform(k2, (30,), jnp.float32, -bound1, bound1)
    w2 = jax.random.uniform(k3, (30, 1), jnp.float32, -bound2, bound2)
    b2 = jax.random.uniform(k4, (1,), jnp.float32, -bound2, bound2)
    return w1, b1, w2, b2


if __name__ == "__main__":
    key = jax.random.PRNGKey(0)
    k_x, k_p = jax.random.split(key)

    w1, b1, w2, b2 = init_params(k_p)

    def reference(xx):
        return jax.nn.sigmoid(jnp.maximum(xx @ w1 + b1, 0.0) @ w2 + b2)

    # Ragged multi-tile path: B=200 -> tb=128, 2 tiles, partial (masked) last tile, no padding.
    B = 200
    x = jax.random.normal(k_x, (B, IN_FEATURES), jnp.float32)
    y = jax.block_until_ready(housing_model_forward(x, w1, b1, w2, b2))
    assert y.shape == (B, 1)
    # Tolerance loosened vs. 1e-5 because of the approximate EUP reciprocal in the sigmoid.
    assert jnp.allclose(y, reference(x), atol=2e-3, rtol=0.0)

    # Tiny-batch / single full-array tile path (B not a multiple of 8 is fine here).
    x_small = jax.random.normal(k_x, (8, IN_FEATURES), jnp.float32)
    y_small = jax.block_until_ready(housing_model_forward(x_small, w1, b1, w2, b2))
    assert y_small.shape == (8, 1)
    assert jnp.allclose(y_small, reference(x_small), atol=2e-3, rtol=0.0)

    # Exactly-dividing multi-tile path with a small explicit tile (exercises grid=4).
    x_mid = jax.random.normal(k_x, (512, IN_FEATURES), jnp.float32)
    y_mid = jax.block_until_ready(housing_model_forward(x_mid, w1, b1, w2, b2, block_rows=128))
    assert y_mid.shape == (512, 1)
    assert jnp.allclose(y_mid, reference(x_mid), atol=2e-3, rtol=0.0)

    print("KERNEL_OK")
</pallas_src>

<mosaic_0001>
module attributes {stable_mosaic.version = 11 : i64} {
  func.func @_mlp_kernel(%arg0: i32, %arg1: memref<128x60xf32, #tpu.memory_space<vmem>>, %arg2: memref<30x60xf32, #tpu.memory_space<vmem>>, %arg3: memref<30x1xf32, #tpu.memory_space<vmem>>, %arg4: memref<30x1xf32, #tpu.memory_space<vmem>>, %arg5: memref<1xf32, #tpu.memory_space<smem>>, %arg6: memref<1x128xf32, #tpu.memory_space<vmem>>) attributes {dimension_semantics = [#tpu.dimension_semantics<parallel>], iteration_bounds = array<i64: 2>, scalar_prefetch = 0 : i64, scratch_operands = 0 : i64, tpu.core_type = #tpu.core_type<tc>, window_params = [{transform_indices = @transform_0, window_bounds = array<i64: 128, 60>}, {pipeline_mode = #tpu.pipeline_mode<synchronous>, transform_indices = @transform_1, window_bounds = array<i64: 30, 60>}, {pipeline_mode = #tpu.pipeline_mode<synchronous>, transform_indices = @transform_2, window_bounds = array<i64: 30, 1>}, {pipeline_mode = #tpu.pipeline_mode<synchronous>, transform_indices = @transform_3, window_bounds = array<i64: 30, 1>}, {transform_indices = @transform_4, window_bounds = array<i64: 1>}, {transform_indices = @transform_5, window_bounds = array<i64: 1, 128>}]} {
    %c0 = arith.constant 0 : index
    %c0_0 = arith.constant 0 : index
    %0 = vector.load %arg2[%c0, %c0_0] : memref<30x60xf32, #tpu.memory_space<vmem>>, vector<30x60xf32>
    %c0_1 = arith.constant 0 : index
    %c0_2 = arith.constant 0 : index
    %1 = vector.load %arg1[%c0_1, %c0_2] : memref<128x60xf32, #tpu.memory_space<vmem>>, vector<128x60xf32>
    %cst = arith.constant dense<0.000000e+00> : vector<30x128xf32>
    %2 = tpu.matmul %0, %1, %cst {dimension_numbers = #tpu.dot_dimension_numbers<[1], [1], [0], [0], [0, 0, 1, 0], [], []>} : vector<30x60xf32>, vector<128x60xf32>, vector<30x128xf32> -> vector<30x128xf32>
    %c0_3 = arith.constant 0 : index
    %c0_4 = arith.constant 0 : index
    %3 = vector.load %arg3[%c0_3, %c0_4] : memref<30x1xf32, #tpu.memory_space<vmem>>, vector<30x1xf32>
    %4 = vector.broadcast %3 : vector<30x1xf32> to vector<30x128xf32>
    %5 = arith.addf %2, %4 : vector<30x128xf32>
    %cst_5 = arith.constant 0.000000e+00 : f32
    %6 = vector.broadcast %cst_5 : f32 to vector<30x128xf32>
    %7 = arith.maximumf %5, %6 : vector<30x128xf32>
    %c0_6 = arith.constant 0 : index
    %c0_7 = arith.constant 0 : index
    %8 = vector.load %arg4[%c0_6, %c0_7] : memref<30x1xf32, #tpu.memory_space<vmem>>, vector<30x1xf32>
    %9 = vector.broadcast %8 : vector<30x1xf32> to vector<30x128xf32>
    %10 = arith.mulf %7, %9 : vector<30x128xf32>
    %cst_8 = arith.constant dense<0.000000e+00> : vector<128xf32>
    %11 = vector.multi_reduction <add>, %10, %cst_8 [0] : vector<30x128xf32> to vector<128xf32>
    %12 = vector.shape_cast %11 : vector<128xf32> to vector<1x128xf32>
    %c0_9 = arith.constant 0 : index
    %13 = memref.load %arg5[%c0_9] : memref<1xf32, #tpu.memory_space<smem>>
    %14 = vector.broadcast %13 : f32 to vector<1x128xf32>
    %15 = arith.addf %12, %14 : vector<1x128xf32>
    %cst_10 = arith.constant 0.000000e+00 : f32
    %16 = vector.broadcast %cst_10 : f32 to vector<1x128xf32>
    %17 = arith.subf %16, %15 : vector<1x128xf32>
    %18 = math.exp %17 : vector<1x128xf32>
    %cst_11 = arith.constant 1.000000e+00 : f32
    %19 = vector.broadcast %cst_11 : f32 to vector<1x128xf32>
    %20 = arith.addf %19, %18 : vector<1x128xf32>
    %21 = tpu.reciprocal %20 {approx = true} : vector<1x128xf32> -> vector<1x128xf32>
    %c0_12 = arith.constant 0 : index
    %c0_13 = arith.constant 0 : index
    %22 = vector.load %arg6[%c0_12, %c0_13] : memref<1x128xf32, #tpu.memory_space<vmem>>, vector<1x128xf32>
    tpu.vector_store %arg6[%c0_12, %c0_13], %21 {strides = array<i32>} : memref<1x128xf32, #tpu.memory_space<vmem>>, vector<1x128xf32>,
    return
  }
  func.func @transform_0(%arg0: i32) -> (i32, i32) {
    %c0_i32 = arith.constant 0 : i32
    %c0_i32_0 = arith.constant 0 : i32
    return %arg0, %c0_i32 : i32, i32
  }
  func.func @transform_1(%arg0: i32) -> (i32, i32) {
    %c0_i32 = arith.constant 0 : i32
    %c0_i32_0 = arith.constant 0 : i32
    %c0_i32_1 = arith.constant 0 : i32
    return %c0_i32, %c0_i32_0 : i32, i32
  }
  func.func @transform_2(%arg0: i32) -> (i32, i32) {
    %c0_i32 = arith.constant 0 : i32
    %c0_i32_0 = arith.constant 0 : i32
    %c0_i32_1 = arith.constant 0 : i32
    return %c0_i32, %c0_i32_0 : i32, i32
  }
  func.func @transform_3(%arg0: i32) -> (i32, i32) {
    %c0_i32 = arith.constant 0 : i32
    %c0_i32_0 = arith.constant 0 : i32
    %c0_i32_1 = arith.constant 0 : i32
    return %c0_i32, %c0_i32_0 : i32, i32
  }
  func.func @transform_4(%arg0: i32) -> i32 {
    %c0_i32 = arith.constant 0 : i32
    %c0_i32_0 = arith.constant 0 : i32
    return %c0_i32 : i32
  }
  func.func @transform_5(%arg0: i32) -> (i32, i32) {
    %c0_i32 = arith.constant 0 : i32
    %c0_i32_0 = arith.constant 0 : i32
    return %c0_i32, %arg0 : i32, i32
  }
}

</mosaic_0001>

<bundles_post_ra>
// kernel: tpu_custom_call.1
= control target key start
LH: loop header
LB: loop body
LE: loop exit
PB: predicated region body
PF: predicated region fallthrough
CT: control target
= control target key end

     0   :  { %s1078_s0 = inlined_call_operand.vmem [shape: f32[200,60], index: 0, kind: input, shape index: {}]   ;;  %s1079_s1 = inlined_call_operand.vmem [shape: f32[30,60], index: 1, kind: input, shape index: {}]   ;;  %s1080_s2 = inlined_call_operand.vmem [shape: f32[30,1], index: 2, kind: input, shape index: {}]   ;;  %s1081_s3 = inlined_call_operand.vmem [shape: f32[30,1], index: 3, kind: input, shape index: {}]   ;;  %s1082_s4 = inlined_call_operand.<no memory space> [shape: f32[1], index: 4, kind: input, shape index: {}]   ;;  %s1083_s5 = inlined_call_operand.hbm [shape: f32[1,200], index: 5, kind: output, shape index: {}]  }
   0x1   :  { %10 = sst [smem:[#allocation2]] %s1082_s4 }
   0x2   :  { %11 = vsyncpa [#allocation4], 0 }
   0x3   :  { %13 = vsyncpa [#allocation4 + $0x1], 0  ;;  %s851_s20 = smov 0   ;;  %s853_s21 = smov 0  }
   0x4   :  { %s855_s22 = smov 0   ;;  %s857_s23 = smov 0  }
   0x5 LB: > { %s554_s4 = sadd.s32 4294967295, %s814_s23   ;;  %s555_s24 = sadd.s32 4294967294, %s814_s23   ;;  %s814_s23 = sphi %s857_s23, %s1091_s23   ;;  %s810_s22 = sphi %s855_s22, %s1090_s22   ;;  %s806_s21 = sphi %s853_s21, %s1089_s21   ;;  %s802_s20 = sphi %s851_s20, %s1088_s20  }
   0x6   : > { %s874_s25 = sadd.s32 1, %s814_s23   ;;  %s136_s26 = sadd.s32 1, %s810_s22 }
   0x7   : > { %s133_s27 = ssub.s32 %s814_s23, %s874_s25  ;;  %p146_p0 = scmp.ne.s32.totalorder %s810_s22, %s806_s21 }
   0x8   : > { %p134_p1 = scmp.eq.s32.totalorder %s133_s27, 0  ;;  %p147_p2 = scmp.eq.s32.totalorder %s554_s4, 1 }
   0x9   : > { %p152_p3 = scmp.ne.s32.totalorder %s806_s21, %s802_s20  ;;  %p153_p4 = scmp.eq.s32.totalorder %s555_s24, 1 }
   0xa   : > { %s884_s28 = scalar_select %p134_p1, %s810_s22, %s136_s26  }
   0xb   : > { %p886_p5 = por %p147_p2, %p146_p0  ;;  %p890_p6 = por %p153_p4, %p152_p3 }
   0xc   : > { %p558_p7 = scmp.ge.s32.totalorder %s814_s23, 1  ;;  %p200_p8 = scmp.lt.s32.totalorder %s814_s23, 3 }
   0xe   : > { %p201_p9 = pnand %p558_p7, %p200_p8 }
   0xf   : > { %s896_s6 = sshll.u32 (!%p201_p9), %s554_s4, 4  ;;  %vm289_vm0 = vcmask (!%p201_p9), 490496   ;;  %v245_v0 = vld [vmem:[%s1079_s1] sm:$0xff] (!%p201_p9)  ;;  %v247_v1 = vld [vmem:[%s1079_s1 + $0x10] sm:$0xff] (!%p201_p9)  ;;  %v816_v3 = vmov (!%p201_p9), 0   ;;  %v266_v5 = vld [vmem:[%s1080_s2 + $0x8] sm:$0xff] (!%p201_p9) }
  0x10   : > { %204 = sbr.rel (%p201_p9) target bundleno = 375 (0x177), region = 40  ;;  %p236_p10 = scmp.lt.s32.totalorder (!%p201_p9), %s896_s6, 24  ;;  %636 = vmatprep.mubr.msk.f32.mxu0 (!%p201_p9), %vm289_vm0, %v245_v0  ;;  %639 = vmatprep.mubr.msk.f32.mxu1 (!%p201_p9), %vm289_vm0, %v247_v1  ;;  %v265_v2 = vld [vmem:[%s1080_s2] sm:$0xff] (!%p201_p9)  ;;  %v267_v4 = vld [vmem:[%s1080_s2 + $0x10] sm:$0xff] (!%p201_p9)  ;;  %v268_v6 = vld [vmem:[%s1080_s2 + $0x18] sm:$0x3f] (!%p201_p9) }
  0x11   : > { %746 = vset.pattern.permute.xlu0 (!%p201_p9), %v816_v3  ;;  %747 = vset.pattern.permute.xlu1 (!%p201_p9), %v816_v3  ;;  %vm927_vm1 = vmpackc.low (!%p201_p9), %vm289_vm0, %vm289_vm0  ;;  %v439_v14 = vld [vmem:[%s1081_s3] sm:$0xff] (!%p201_p9)  ;;  %v440_v15 = vld [vmem:[%s1081_s3 + $0x8] sm:$0xff] (!%p201_p9)  ;;  %vm469_vm2 = vcmask (!%p201_p9), 1045504   ;;  %s478_s19 = sld [smem:[#allocation2]] (!%p201_p9)  ;;  %s1036_s8 = scalar_lea.hbm (!%p201_p9), %s1083_s5, %s896_s6 }
  0x12   : > { %271 = vperm.xlu0 (!%p201_p9), %746, %v265_v2   ;;  %281 = vperm.xlu1 (!%p201_p9), %747, %v267_v4   ;;  %v441_v18 = vld [vmem:[%s1081_s3 + $0x10] sm:$0xff] (!%p201_p9)  ;;  %v442_v19 = vld [vmem:[%s1081_s3 + $0x18] sm:$0x3f] (!%p201_p9)  ;;  %v246_v36 = vld [vmem:[%s1079_s1 + $0x8] sm:$0xff] (!%p201_p9)  ;;  %s817_s11 = smov (!%p201_p9), [#allocation3]  }
  0x13   : > { %v248_v37 = vld [vmem:[%s1079_s1 + $0x18] sm:$0x3f] (!%p201_p9)  ;;  %s756_s12 = sshll.u32 (!%p201_p9), %s817_s11, 4  ;;  %s757_s12 = int_to_ptr.vmem [resolvable:$false] %s756_s12 }
  0x14   : > { %s758_s13 = scalar_lea.vmem (!%p201_p9), %s757_s12, 32 }
  0x16   : > { %276 = vperm.xlu0 (!%p201_p9), %746, %v266_v5   ;;  %286 = vperm.xlu1 (!%p201_p9), %747, %v268_v6  }
  0x17   : > { %s237_s15 = scalar_select %p236_p10, %s896_s6, 24  ;;  %v479_v7 = vstv %s478_s19 }
  0x19   : > { %s560_s4 = sshll.u32 %s237_s15, 3 }
  0x1a   : > { %s923_s27 = scalar_lea.vmem %s1078_s0, %s560_s4  ;;  %445 = vperm.xlu0 %746, %v439_v14   ;;  %450 = vperm.xlu1 %747, %v440_v15   ;;  %s229_s4 = sand.u32 1, %s806_s21  }
  0x1b   : > { %v249_v8 = vld [vmem:[%s923_s27] sm:$0xff]  ;;  %v250_v9 = vld [vmem:[%s923_s27 + $0x8] sm:$0xff]  ;;  %v251_v10 = vld [vmem:[%s923_s27 + $0x10] sm:$0xff]  ;;  %s230_s24 = scalar_lea.vmem [#allocation3], %s229_s4  ;;  %s488_s9 = scalar_lea.sflag [#allocation4], %s229_s4 }
  0x1c   : > { %v642_v11 = vpack.c.bf16 %v250_v9, %v249_v8  ;;  %v252_v12 = vld [vmem:[%s923_s27 + $0x18] sm:$0xff]  ;;  %v253_v16 = vld [vmem:[%s923_s27 + $0x20] sm:$0xff]  ;;  %v254_v17 = vld [vmem:[%s923_s27 + $0x28] sm:$0xff]  ;;  %s500_s26 = sshll.u32 %s230_s24, 4  ;;  %s1038_s26 = int_to_ptr.vmem [resolvable:$true] %s500_s26 }
  0x1d   : > { %v648_v13 = vpack.c.bf16 %v252_v12, %v251_v10  ;;  %v654_v20 = vpack.c.bf16 %v254_v17, %v253_v16  ;;  %v255_v21 = vld [vmem:[%s923_s27 + $0x30] sm:$0xff]  ;;  %v256_v22 = vld [vmem:[%s923_s27 + $0x38] sm:$0xff]  ;;  %v257_v24 = vld [vmem:[%s923_s27 + $0x40] sm:$0xff]  ;;  %s752_s10 = scalar_lea.vmem %s1038_s26, 16  ;;  %p759_p0 = scmp.lt.s32.totalorder %s1038_s26, %s757_s12 }
  0x1e   : > { %644 = vmatprep.subr.msk.bf16.mxu0 %vm927_vm1, %v642_v11  ;;  %690 = vmatprep.subr.msk.bf16.mxu1 %vm927_vm1, %v642_v11  ;;  %v660_v23 = vpack.c.bf16 %v256_v22, %v255_v21  ;;  %v258_v25 = vld [vmem:[%s923_s27 + $0x48] sm:$0xff]  ;;  %v259_v27 = vld [vmem:[%s923_s27 + $0x50] sm:$0xff]  ;;  %v260_v28 = vld [vmem:[%s923_s27 + $0x58] sm:$0xff]  ;;  %p753_p11 = scmp.ne.s32.totalorder %s1038_s26, %s752_s10  ;;  %p760_p1 = scmp.lt.s32.totalorder %s758_s13, %s752_s10 }
  0x1f   : > { %647 = vmatpush3.bf16.xpose.msk.msra.mxu0 %vm927_vm1, %v642_v11  ;;  %698 = vmatpush3.bf16.xpose.msk.msra.mxu1 %vm927_vm1, %v642_v11  ;;  %v666_v26 = vpack.c.bf16 %v258_v25, %v257_v24  ;;  %v672_v29 = vpack.c.bf16 %v260_v28, %v259_v27  ;;  %v261_v30 = vld [vmem:[%s923_s27 + $0x60] sm:$0xff]  ;;  %v262_v31 = vld [vmem:[%s923_s27 + $0x68] sm:$0xff]  ;;  %v263_v33 = vld [vmem:[%s923_s27 + $0x70] sm:$0xff] }
  0x20   : > { %650 = vmatprep.subr.msk.bf16.mxu0 %vm927_vm1, %v648_v13  ;;  %691 = vmatprep.subr.msk.bf16.mxu1 %vm927_vm1, %v648_v13  ;;  %v678_v32 = vpack.c.bf16 %v262_v31, %v261_v30  ;;  %v264_v34 = vld [vmem:[%s923_s27 + $0x78] sm:$0xff]  ;;  %p754_p12 = pnand %p753_p11, %p886_p5  ;;  %p761_p2 = por %p760_p1, %p759_p0 }
  0x21   : > { %455 = vperm.xlu0 %746, %v441_v18   ;;  %460 = vperm.xlu1 %747, %v442_v19   ;;  %v684_v35 = vpack.c.bf16 %v264_v34, %v263_v33 }
  0x22   : > { %p755_p13 = pneg %p754_p12 }
  0x24   : > { %p762_p3 = pnand %p761_p2, %p755_p13 }
  0x27   : > { %653 = vmatpush3.bf16.xpose.msk.msra.mxu0 %vm927_vm1, %v648_v13  ;;  %699 = vmatpush3.bf16.xpose.msk.msra.mxu1 %vm927_vm1, %v648_v13 }
  0x28   : > { %656 = vmatprep.subr.msk.bf16.mxu0 %vm927_vm1, %v654_v20  ;;  %692 = vmatprep.subr.msk.bf16.mxu1 %vm927_vm1, %v654_v20 }
  0x2f   : > { %659 = vmatpush3.bf16.xpose.msk.msra.mxu0 %vm927_vm1, %v654_v20  ;;  %700 = vmatpush3.bf16.xpose.msk.msra.mxu1 %vm927_vm1, %v654_v20 }
  0x30   : > { %662 = vmatprep.subr.msk.bf16.mxu0 %vm927_vm1, %v660_v23  ;;  %693 = vmatprep.subr.msk.bf16.mxu1 %vm927_vm1, %v660_v23 }
  0x37   : > { %665 = vmatpush3.bf16.xpose.msk.msra.mxu0 %vm927_vm1, %v660_v23  ;;  %701 = vmatpush3.bf16.xpose.msk.msra.mxu1 %vm927_vm1, %v660_v23 }
  0x38   : > { %668 = vmatprep.subr.msk.bf16.mxu0 %vm927_vm1, %v666_v26  ;;  %694 = vmatprep.subr.msk.bf16.mxu1 %vm927_vm1, %v666_v26 }
  0x3f   : > { %671 = vmatpush3.bf16.xpose.msk.msra.mxu0 %vm927_vm1, %v666_v26  ;;  %702 = vmatpush3.bf16.xpose.msk.msra.mxu1 %vm927_vm1, %v666_v26 }
  0x40   : > { %674 = vmatprep.subr.msk.bf16.mxu0 %vm927_vm1, %v672_v29  ;;  %695 = vmatprep.subr.msk.bf16.mxu1 %vm927_vm1, %v672_v29 }
  0x47   : > { %677 = vmatpush3.bf16.xpose.msk.msra.mxu0 %vm927_vm1, %v672_v29  ;;  %703 = vmatpush3.bf16.xpose.msk.msra.mxu1 %vm927_vm1, %v672_v29 }
  0x48   : > { %680 = vmatprep.subr.msk.bf16.mxu0 %vm927_vm1, %v678_v32  ;;  %696 = vmatprep.subr.msk.bf16.mxu1 %vm927_vm1, %v678_v32 }
  0x4f   : > { %683 = vmatpush3.bf16.xpose.msk.msra.mxu0 %vm927_vm1, %v678_v32  ;;  %704 = vmatpush3.bf16.xpose.msk.msra.mxu1 %vm927_vm1, %v678_v32 }
  0x50   : > { %686 = vmatprep.subr.msk.bf16.mxu0 %vm927_vm1, %v684_v35  ;;  %697 = vmatprep.subr.msk.bf16.mxu1 %vm927_vm1, %v684_v35 }
  0x57   : > { %689 = vmatpush3.bf16.xpose.msk.msra.mxu0 %vm927_vm1, %v684_v35  ;;  %705 = vmatpush3.bf16.xpose.msk.msra.mxu1 %vm927_vm1, %v684_v35 }
  0x5e   : > { %637 = vmatmul.mubr.msk.f32.vlgmr.msra.gmra.mrb[0].mxu0 %vm289_vm0, %v246_v36  ;;  %640 = vmatmul.mubr.msk.f32.vlgmr.msra.gmra.mrb[0].mxu1 %vm289_vm0, %v248_v37 }
  0x91   : > { %v272_v38 = vpop.permute.xlu0 %271  ;;  %v282_v39 = vpop.permute.xlu1 %281 }
  0x95   : > { %v277_v40 = vpop.permute.xlu0 %276  ;;  %v287_v41 = vpop.permute.xlu1 %286 }
  0x99   : > { %v446_v42 = vpop.permute.xlu0 %445  ;;  %v451_v43 = vpop.permute.xlu1 %450 }
  0xa0   : > { %v461_v57 = vpop.permute.xlu1 %460  ;;  %v456_v59 = vpop.permute.xlu0 %455 }
 0x131   : > { %v638_v44 = vpop.f32.mrb[0].mxu0  ;;  %v641_v45 = vpop.f32.mrb[0].mxu1 }
 0x132   : > { %v422_v46 = vadd.f32 %v638_v44, %v277_v40  ;;  %v432_v47 = vadd.f32 %v641_v45, %v287_v41  ;;  %v416_v48 = vpop.f32.mrb[1].mxu0  ;;  %v426_v49 = vpop.f32.mrb[1].mxu1 }
 0x133   : > { %v417_v50 = vadd.f32 %v416_v48, %v272_v38  ;;  %v427_v51 = vadd.f32 %v426_v49, %v282_v39 }
 0x134   : > { %v436_v52 = vmax.f32 %v422_v46, 0.0  ;;  %v438_v53 = vmax.f32 %v432_v47, 0.0 }
 0x135   : > { %v435_v54 = vmax.f32 %v417_v50, 0.0  ;;  %v437_v55 = vmax.f32 %v427_v51, 0.0 }
 0x136   : > { %v464_v56 = vmul.f32 %v451_v43, %v436_v52  ;;  %v466_v60 = vmul.f32 %v461_v57, %v438_v53 }
 0x137   : > { %v463_v58 = vmul.f32 %v446_v42, %v435_v54  ;;  %v465_v62 = vmul.f32 %v456_v59, %v437_v55 }
 0x138   : > { %v470_v0 = vsel %vm469_vm2, %v466_v60, 0.0 }
 0x139   : > { %v467_v61 = vadd.f32 %v464_v56, %v463_v58 }
 0x13b   : > { %v468_v63 = vadd.f32 %v467_v61, %v465_v62 }
 0x13d   : > { %v471_v1 = vadd.f32 %v470_v0, %v468_v63 }
 0x13f   : > { %v472_v2 = vrot.slane %v471_v1, 4 }
 0x141   : > { %v473_v3 = vadd.f32 %v472_v2, %v471_v1 }
 0x143   : > { %v474_v4 = vrot.slane %v473_v3, 2 }
 0x145   : > { %v475_v5 = vadd.f32 %v474_v4, %v473_v3 }
 0x147   : > { %v476_v6 = vrot.slane %v475_v5, 1 }
 0x149   : > { %v477_v8 = vadd.f32 %v476_v6, %v475_v5 }
 0x14b   : > { %v480_v9 = vadd.f32 %v479_v7, %v477_v8 }
 0x14d   : > { %v481_v10 = vsub.f32 0.0, %v480_v9 }
 0x14f   : > { %v482_v11 = vmul.f32 1.442695, %v481_v10 }
 0x151   : > { %748 = vpow2.f32 %v482_v11 }
 0x15b   : > { %v749_v12 = vpop.eup %748 }
 0x15c   : > { %v484_v13 = vadd.f32 1.0, %v749_v12 }
 0x15e   : > { %750 = vrcp.f32 %v484_v13 }
 0x168   : > { %v751_v14 = vpop.eup %750 }
 0x169   : > { %486 = vst [vmem:[%s230_s24] sm:$0x1] %v751_v14 }
 0x16a   : > { %765 = shalt.err (!%p762_p3)
}
 0x16b   : > { %s766_s6 = scalar_lea.hbm %s1036_s8, 16  ;;  %s770_s16 = scalar_lea.hbm %s1083_s5, 32 }
 0x16c   : > { %p767_p4 = scmp.ne.s32.totalorder %s1036_s8, %s766_s6  ;;  %p771_p9 = scmp.lt.u32.totalorder %s1036_s8, %s1083_s5 }
 0x16d   : > { %p772_p10 = scmp.lt.u32.totalorder %s770_s16, %s766_s6  ;;  %p774_p12 = scmp.lt.u32.totalorder %s766_s6, %s1036_s8 }
 0x16e   : > { %p768_p7 = pnand %p767_p4, %p886_p5 }
 0x16f   : > { %p773_p11 = por %p772_p10, %p771_p9 }
 0x170   : > { %p769_p8 = pneg %p768_p7 }
 0x171   : > { %p775_p13 = por %p774_p12, %p773_p11 }
 0x173   : > { %p776_p0 = pnand %p775_p13, %p769_p8 }
 0x175   : > { %779 = shalt.err (!%p776_p0)
}
 0x176   : > { %706 = dma.vmem_to_hbm [thread:$0]  (%p886_p5), %s1038_s26, 16, %s1036_s8, %s488_s9  }
 0x177 PF: > { %p712_p1 = scmp.ge.s32.totalorder %s814_s23, 2  ;;  %s512_s19 = sand.u32 1, %s802_s20  }
 0x178   : > { %s513_s4 = scalar_lea.sflag [#allocation4], %s512_s19 }
 0x179   : > { %p709_p2 = pnand %p712_p1, %p890_p6 }
 0x17b   : > { %797 = dma.done.wait (!%p709_p2), %s513_s4, 16  }
 0x17c   : > { %799 = vsyncadd (!%p709_p2), %s513_s4, 4294967280  ;;  %p16_p3 = scmp.ge.s32.totalorder %s874_s25, 4   ;;  %s1088_s20 = smov %s806_s21 }
 0x17d   : > { %s1089_s21 = smov %s810_s22  ;;  %s1090_s22 = smov %s884_s28 }
 0x17e   : > { %s1091_s23 = smov %s874_s25  ;;  %18 = sbr.rel (!%p16_p3) target bundleno = 5 (0x5), region = 75 }
 0x185   :  { %517 = vsyncpa [#allocation4], 1 }
 0x186   :  { %519 = vsyncpa [#allocation4 + $0x1], 1 }

</bundles_post_ra>
